<compile_context>
chip_gen: v7x
topology: tpu7x:2x2x1
jax: 0.10.0
libtpu: 0.0.40
codegen_flags: <defaults>
</compile_context>

<pallas_src>
import functools

import jax
import jax.numpy as jnp
from jax.experimental import pallas as pl
from jax.experimental.pallas import tpu as pltpu


# ----------------------------- kernel ----------------------------------------
def _output_unit_kernel(q_ref, m_ref, w1_ref, b1_ref, w2_ref, b2_ref, o_ref, *, d):
    # q/m already arrive in the compute dtype (f32 or bf16) from the wrapper.
    q = q_ref[...]                          # (bB, 2d)
    m = m_ref[...]                          # (bB, d)

    # Linear1(cat([q, m], 1)) == q @ W1t[:2d] + m @ W1t[2d:]
    # (static ref slices of the single pre-transposed (3d, d) weight -> zero-
    #  cost views, no concat materialisation, one packed weight DMA)
    h = (jnp.dot(q, w1_ref[: 2 * d, :], preferred_element_type=jnp.float32)
         + jnp.dot(m, w1_ref[2 * d:, :], preferred_element_type=jnp.float32)
         + b1_ref[...])                     # (bB, d), f32

    h = jnp.maximum(h, 0.0)                 # ReLU on the VPU (f32)

    out = (jnp.dot(h.astype(w2_ref.dtype), w2_ref[...],
                   preferred_element_type=jnp.float32)
           + b2_ref[...])                   # (bB, nc_pad), f32
    o_ref[...] = out.astype(o_ref.dtype)    # lane-dense (nc_pad % 128 == 0)


# ----------------------------- helpers ----------------------------------------
def _round_up(x, m):
    return ((x + m - 1) // m) * m


def _pick_block_b(B, max_block=2048, min_split=512):
    """Large blocks amortize the ~0.35us/step grid overhead; when the batch is
    big enough, keep >=2 grid steps so the "parallel" axis can shard across
    TensorCores (v7x megacore)."""
    if B < min_split:
        return _round_up(B, 8)
    return min(max_block, _round_up(pl.cdiv(B, 2), 8))


# ----------------------------- one-time param glue ---------------------------
def prepare_params(torch_params, compute_dtype=jnp.float32, lane=128):
    """Convert torch-layout OutputUnit params to kernel layout ONCE per model.

    compute_dtype=jnp.bfloat16 -> bf16 MXU + bf16 activation DMA (v6e / v7x).
    Keep the default f32 on v5e (no bf16 VPU there).
    The class dimension is zero-padded to a multiple of 128 for lane-dense,
    unmasked output stores; the wrapper slices back to num_classes.
    """
    w1 = torch_params["w1"]                 # (d, 3d)  nn.Linear(3d, d).weight
    b1 = torch_params["b1"]                 # (d,)
    w2 = torch_params["w2"]                 # (nc, d)  nn.Linear(d, nc).weight
    b2 = torch_params["b2"]                 # (nc,)
    d = w1.shape[0]
    nc = w2.shape[0]
    nc_pad = _round_up(nc, lane)

    w2t = jnp.zeros((d, nc_pad), compute_dtype).at[:, :nc].set(
        jnp.asarray(w2.T, compute_dtype))
    b2p = jnp.zeros((1, nc_pad), jnp.float32).at[:, :nc].set(
        jnp.asarray(b2, jnp.float32).reshape(1, nc))

    return {
        "d": d,
        "num_classes": nc,
        "nc_pad": nc_pad,
        "w1t": jnp.asarray(w1.T, compute_dtype),          # (3d, d)  in-major
        "b1":  jnp.asarray(b1, jnp.float32).reshape(1, d),
        "w2t": w2t,                                        # (d, nc_pad)
        "b2":  b2p,                                        # (1, nc_pad)
    }


# ----------------------------- forward wrapper --------------------------------
def output_unit_forward(prep, q, m, *, block_b=None):
    """Pallas implementation of OutputUnit.forward(q, m) -> (B, num_classes) f32."""
    B = q.shape[0]
    d, nc, nc_pad = prep["d"], prep["num_classes"], prep["nc_pad"]
    assert q.shape == (B, 2 * d) and m.shape == (B, d)

    cdt = prep["w1t"].dtype
    # Cast activations at the HBM boundary: bf16 halves the dominant q/m DMA
    # traffic on v6e/v7x; identity under the default f32 path (v5e).
    q = q.astype(cdt)
    m = m.astype(cdt)

    if block_b is None:
        block_b = _pick_block_b(B)
    block_b = max(8, _round_up(int(block_b), 8))

    # Auto-pad the batch to a multiple of block_b (zero rows), slice back below.
    Bp = _round_up(B, block_b)
    if Bp != B:
        q = jnp.pad(q, ((0, Bp - B), (0, 0)))
        m = jnp.pad(m, ((0, Bp - B), (0, 0)))
    grid = (Bp // block_b,)

    # VMEM estimate: double-buffered activation tiles + resident weights.
    in_bytes = jnp.dtype(cdt).itemsize
    vmem_est = (2 * block_b * (3 * d * in_bytes + nc_pad * 4)
                + (3 * d * d + d * nc_pad) * in_bytes
                + (d + nc_pad) * 4)
    vmem_limit = None
    if vmem_est > (12 << 20):               # only needed for very large block_b
        vmem_limit = int(min(vmem_est * 2, 100 << 20))

    kernel = functools.partial(_output_unit_kernel, d=d)

    out = pl.pallas_call(
        kernel,
        out_shape=jax.ShapeDtypeStruct((Bp, nc_pad), jnp.float32),
        grid=grid,
        in_specs=[
            pl.BlockSpec((block_b, 2 * d), lambda i: (i, 0)),   # q
            pl.BlockSpec((block_b, d),     lambda i: (i, 0)),   # m
            pl.BlockSpec((3 * d, d),       lambda i: (0, 0)),   # w1t (resident)
            pl.BlockSpec((1, d),           lambda i: (0, 0)),   # b1
            pl.BlockSpec((d, nc_pad),      lambda i: (0, 0)),   # w2t (resident)
            pl.BlockSpec((1, nc_pad),      lambda i: (0, 0)),   # b2
        ],
        out_specs=pl.BlockSpec((block_b, nc_pad), lambda i: (i, 0)),
        compiler_params=pltpu.CompilerParams(
            dimension_semantics=("parallel",),
            vmem_limit_bytes=vmem_limit),
    )(q, m, prep["w1t"], prep["b1"], prep["w2t"], prep["b2"])

    return out[:B, :nc]


# ----------------------------- reference (plain JAX) --------------------------
def output_unit_ref(params, q, m):
    x = jnp.concatenate([q, m], axis=1)
    h = jnp.maximum(x @ params["w1"].T + params["b1"], 0.0)
    return h @ params["w2"].T + params["b2"]


def init_params(key, d, num_classes):
    ks = jax.random.split(key, 4)
    s = 0.1
    return {
        "w1": s * jax.random.normal(ks[0], (d, 3 * d), jnp.float32),
        "b1": s * jax.random.normal(ks[1], (d,), jnp.float32),
        "w2": s * jax.random.normal(ks[2], (num_classes, d), jnp.float32),
        "b2": s * jax.random.normal(ks[3], (num_classes,), jnp.float32),
    }


if __name__ == "__main__":
    key = jax.random.PRNGKey(0)
    d, num_classes = 32, 28
    B = 8                         # >= 8 rows -> all sublanes carry useful work
    kp, kq, km, kq2, km2 = jax.random.split(key, 5)

    torch_params = init_params(kp, d, num_classes)
    prep = prepare_params(torch_params)          # one-time layout glue (f32)

    q = jax.random.normal(kq, (B, 2 * d), jnp.float32)
    m = jax.random.normal(km, (B, d), jnp.float32)

    out = jax.block_until_ready(output_unit_forward(prep, q, m))
    ref = output_unit_ref(torch_params, q, m)
    assert out.shape == (B, num_classes)
    err = float(jnp.max(jnp.abs(out - ref)))
    assert jnp.allclose(out, ref, atol=1e-5, rtol=1e-5), err

    # larger, non-multiple batch: exercises auto block_b (>=2 "parallel" grid
    # steps for v7x megacore), the lane-dense padded output, and batch padding
    B2 = 1030
    q2 = jax.random.normal(kq2, (B2, 2 * d), jnp.float32)
    m2 = jax.random.normal(km2, (B2, d), jnp.float32)
    out2 = jax.block_until_ready(output_unit_forward(prep, q2, m2))
    ref2 = output_unit_ref(torch_params, q2, m2)
    assert out2.shape == (B2, num_classes)
    assert jnp.allclose(out2, ref2, atol=1e-5, rtol=1e-5)

    # bf16 MXU path (v6e / v7x): bf16 weights + bf16 activation DMA, f32 accum
    prep_bf16 = prepare_params(torch_params, compute_dtype=jnp.bfloat16)
    out_bf = jax.block_until_ready(output_unit_forward(prep_bf16, q2, m2))
    assert jnp.allclose(out_bf, ref2, atol=5e-2, rtol=5e-2)

    print("KERNEL_OK")
</pallas_src>

<mosaic_0001>
module attributes {stable_mosaic.version = 11 : i64} {
  func.func @_output_unit_kernel(%arg0: i32, %arg1: memref<8x64xf32, #tpu.memory_space<vmem>>, %arg2: memref<8x32xf32, #tpu.memory_space<vmem>>, %arg3: memref<96x32xf32, #tpu.memory_space<vmem>>, %arg4: memref<1x32xf32, #tpu.memory_space<vmem>>, %arg5: memref<32x128xf32, #tpu.memory_space<vmem>>, %arg6: memref<1x128xf32, #tpu.memory_space<vmem>>, %arg7: memref<8x128xf32, #tpu.memory_space<vmem>>) attributes {dimension_semantics = [#tpu.dimension_semantics<parallel>], iteration_bounds = array<i64: 1>, scalar_prefetch = 0 : i64, scratch_operands = 0 : i64, tpu.core_type = #tpu.core_type<tc>, window_params = [{transform_indices = @transform_0, window_bounds = array<i64: 8, 64>}, {transform_indices = @transform_1, window_bounds = array<i64: 8, 32>}, {pipeline_mode = #tpu.pipeline_mode<synchronous>, transform_indices = @transform_2, window_bounds = array<i64: 96, 32>}, {pipeline_mode = #tpu.pipeline_mode<synchronous>, transform_indices = @transform_3, window_bounds = array<i64: 1, 32>}, {pipeline_mode = #tpu.pipeline_mode<synchronous>, transform_indices = @transform_4, window_bounds = array<i64: 32, 128>}, {pipeline_mode = #tpu.pipeline_mode<synchronous>, transform_indices = @transform_5, window_bounds = array<i64: 1, 128>}, {transform_indices = @transform_6, window_bounds = array<i64: 8, 128>}]} {
    %c0 = arith.constant 0 : index
    %c0_0 = arith.constant 0 : index
    %0 = vector.load %arg1[%c0, %c0_0] : memref<8x64xf32, #tpu.memory_space<vmem>>, vector<8x64xf32>
    %c0_1 = arith.constant 0 : index
    %c0_2 = arith.constant 0 : index
    %1 = vector.load %arg2[%c0_1, %c0_2] : memref<8x32xf32, #tpu.memory_space<vmem>>, vector<8x32xf32>
    %c0_3 = arith.constant 0 : index
    %c0_4 = arith.constant 0 : index
    %2 = vector.load %arg3[%c0_3, %c0_4] : memref<96x32xf32, #tpu.memory_space<vmem>>, vector<64x32xf32>
    %cst = arith.constant dense<0.000000e+00> : vector<8x32xf32>
    %3 = tpu.matmul %0, %2, %cst {dimension_numbers = #tpu.dot_dimension_numbers<[1], [0], [0], [1], [0, 0, 1, 1], [], []>} : vector<8x64xf32>, vector<64x32xf32>, vector<8x32xf32> -> vector<8x32xf32>
    %c64 = arith.constant 64 : index
    %c0_5 = arith.constant 0 : index
    %4 = vector.load %arg3[%c64, %c0_5] : memref<96x32xf32, #tpu.memory_space<vmem>>, vector<32x32xf32>
    %cst_6 = arith.constant dense<0.000000e+00> : vector<8x32xf32>
    %5 = tpu.matmul %1, %4, %cst_6 {dimension_numbers = #tpu.dot_dimension_numbers<[1], [0], [0], [1], [0, 0, 1, 1], [], []>} : vector<8x32xf32>, vector<32x32xf32>, vector<8x32xf32> -> vector<8x32xf32>
    %6 = arith.addf %3, %5 : vector<8x32xf32>
    %c0_7 = arith.constant 0 : index
    %c0_8 = arith.constant 0 : index
    %7 = vector.load %arg4[%c0_7, %c0_8] : memref<1x32xf32, #tpu.memory_space<vmem>>, vector<1x32xf32>
    %8 = vector.broadcast %7 : vector<1x32xf32> to vector<8x32xf32>
    %9 = arith.addf %6, %8 : vector<8x32xf32>
    %cst_9 = arith.constant 0.000000e+00 : f32
    %10 = vector.broadcast %cst_9 : f32 to vector<8x32xf32>
    %11 = arith.maximumf %9, %10 : vector<8x32xf32>
    %c0_10 = arith.constant 0 : index
    %c0_11 = arith.constant 0 : index
    %12 = vector.load %arg5[%c0_10, %c0_11] : memref<32x128xf32, #tpu.memory_space<vmem>>, vector<32x128xf32>
    %cst_12 = arith.constant dense<0.000000e+00> : vector<8x128xf32>
    %13 = tpu.matmul %11, %12, %cst_12 {dimension_numbers = #tpu.dot_dimension_numbers<[1], [0], [0], [1], [0, 0, 1, 1], [], []>} : vector<8x32xf32>, vector<32x128xf32>, vector<8x128xf32> -> vector<8x128xf32>
    %c0_13 = arith.constant 0 : index
    %c0_14 = arith.constant 0 : index
    %14 = vector.load %arg6[%c0_13, %c0_14] : memref<1x128xf32, #tpu.memory_space<vmem>>, vector<1x128xf32>
    %15 = vector.broadcast %14 : vector<1x128xf32> to vector<8x128xf32>
    %16 = arith.addf %13, %15 : vector<8x128xf32>
    %c0_15 = arith.constant 0 : index
    %c0_16 = arith.constant 0 : index
    %17 = vector.load %arg7[%c0_15, %c0_16] : memref<8x128xf32, #tpu.memory_space<vmem>>, vector<8x128xf32>
    tpu.vector_store %arg7[%c0_15, %c0_16], %16 {strides = array<i32>} : memref<8x128xf32, #tpu.memory_space<vmem>>, vector<8x128xf32>,
    return
  }
  func.func @transform_0(%arg0: i32) -> (i32, i32) {
    %c0_i32 = arith.constant 0 : i32
    %c0_i32_0 = arith.constant 0 : i32
    return %arg0, %c0_i32 : i32, i32
  }
  func.func @transform_1(%arg0: i32) -> (i32, i32) {
    %c0_i32 = arith.constant 0 : i32
    %c0_i32_0 = arith.constant 0 : i32
    return %arg0, %c0_i32 : i32, i32
  }
  func.func @transform_2(%arg0: i32) -> (i32, i32) {
    %c0_i32 = arith.constant 0 : i32
    %c0_i32_0 = arith.constant 0 : i32
    %c0_i32_1 = arith.constant 0 : i32
    return %c0_i32, %c0_i32_0 : i32, i32
  }
  func.func @transform_3(%arg0: i32) -> (i32, i32) {
    %c0_i32 = arith.constant 0 : i32
    %c0_i32_0 = arith.constant 0 : i32
    %c0_i32_1 = arith.constant 0 : i32
    return %c0_i32, %c0_i32_0 : i32, i32
  }
  func.func @transform_4(%arg0: i32) -> (i32, i32) {
    %c0_i32 = arith.constant 0 : i32
    %c0_i32_0 = arith.constant 0 : i32
    %c0_i32_1 = arith.constant 0 : i32
    return %c0_i32, %c0_i32_0 : i32, i32
  }
  func.func @transform_5(%arg0: i32) -> (i32, i32) {
    %c0_i32 = arith.constant 0 : i32
    %c0_i32_0 = arith.constant 0 : i32
    %c0_i32_1 = arith.constant 0 : i32
    return %c0_i32, %c0_i32_0 : i32, i32
  }
  func.func @transform_6(%arg0: i32) -> (i32, i32) {
    %c0_i32 = arith.constant 0 : i32
    %c0_i32_0 = arith.constant 0 : i32
    return %arg0, %c0_i32 : i32, i32
  }
}

</mosaic_0001>

<bundles_post_ra>
// kernel: tpu_custom_call.1
= control target key start
LH: loop header
LB: loop body
LE: loop exit
PB: predicated region body
PF: predicated region fallthrough
CT: control target
= control target key end

     0   :  { %v411_v3 = vmov 0.0|0.0   ;;  %vm412_vm0 = vmmov 0   ;;  %v413_v10 = vmov 0.0   ;;  %s527_s0 = inlined_call_operand.vmem [shape: f32[8,64], index: 0, kind: input, shape index: {}]   ;;  %s528_s1 = inlined_call_operand.vmem [shape: f32[8,32], index: 1, kind: input, shape index: {}]   ;;  %s529_s2 = inlined_call_operand.vmem [shape: f32[96,32], index: 2, kind: input, shape index: {}]   ;;  %s530_s3 = inlined_call_operand.vmem [shape: f32[1,32], index: 3, kind: input, shape index: {}]   ;;  %s531_s4 = inlined_call_operand.vmem [shape: f32[32,128], index: 4, kind: input, shape index: {}]   ;;  %s532_s5 = inlined_call_operand.vmem [shape: f32[1,128], index: 5, kind: input, shape index: {}]   ;;  %s533_s6 = inlined_call_operand.hbm [shape: f32[8,128], index: 6, kind: output, shape index: {}]  }
   0x1   :  { %v26_v0 = vld [vmem:[%s529_s2] sm:$0xff]  ;;  %v27_v1 = vld [vmem:[%s529_s2 + $0x8] sm:$0xff]  ;;  %v28_v2 = vld [vmem:[%s529_s2 + $0x10] sm:$0xff]  ;;  %365 = vmatprep.subr.bf16.mxu1 %v411_v3  ;;  %359 = vmatprep.subr.bf16.mxu0 %v411_v3 }
   0x2   :  { %v366_v4 = vpack.c.bf16 %v27_v1, %v26_v0  ;;  %v29_v5 = vld [vmem:[%s529_s2 + $0x18] sm:$0xff]  ;;  %v34_v6 = vld [vmem:[%s529_s2 + $0x40] sm:$0xff]  ;;  %v35_v7 = vld [vmem:[%s529_s2 + $0x48] sm:$0xff]  ;;  %326 = vmatprep.mubr.msk.f32.mxu0 %vm412_vm0, %v413_v10  ;;  %345 = vmatprep.mubr.msk.f32.mxu1 %vm412_vm0, %v413_v10 }
   0x3   :  { %v360_v8 = vpack.c.bf16 %v35_v7, %v34_v6  ;;  %v36_v9 = vld [vmem:[%s529_s2 + $0x50] sm:$0xff]  ;;  %v369_v11 = vpack.c.bf16 %v29_v5, %v28_v2  ;;  %v37_v12 = vld [vmem:[%s529_s2 + $0x58] sm:$0xff]  ;;  %v30_v13 = vld [vmem:[%s529_s2 + $0x20] sm:$0xff] }
   0x4   :  { %367 = vmatpush3.bf16.msra.mxu1 %v366_v4  ;;  %v31_v14 = vld [vmem:[%s529_s2 + $0x28] sm:$0xff]  ;;  %v363_v15 = vpack.c.bf16 %v37_v12, %v36_v9 }
   0x5   :  { %368 = vmatprep.subr.bf16.mxu1 %v411_v3  ;;  %361 = vmatpush3.bf16.msra.mxu0 %v360_v8 }
   0x6   :  { %11 = vsyncpa [#allocation3], 0  ;;  %362 = vmatprep.subr.bf16.mxu0 %v411_v3  ;;  %v372_v16 = vpack.c.bf16 %v31_v14, %v30_v13  ;;  %v32_v17 = vld [vmem:[%s529_s2 + $0x30] sm:$0xff]  ;;  %v33_v18 = vld [vmem:[%s529_s2 + $0x38] sm:$0xff]  ;;  %vm38_vm1 = vcmask 261120   ;;  %vm112_vm2 = vcmask 523264  }
   0x7   :  { %v25_v19 = vld [vmem:[%s528_s1] sm:$0xff]  ;;  %v375_v20 = vpack.c.bf16 %v33_v18, %v32_v17  ;;  %v196_v23 = vld [vmem:[%s531_s4 + $0x8] sm:$0xff]  ;;  %v197_v25 = vld [vmem:[%s531_s4 + $0x10] sm:$0xff] }
   0x8   :  { %370 = vmatpush3.bf16.msra.mxu1 %v369_v11  ;;  %v24_v21 = vld [vmem:[%s527_s0] sm:$0xff]  ;;  %v198_v26 = vld [vmem:[%s531_s4 + $0x18] sm:$0xff] }
   0x9   :  { %371 = vmatprep.subr.bf16.mxu1 %v411_v3  ;;  %364 = vmatpush3.bf16.msra.mxu0 %v363_v15  ;;  %v195_v22 = vld [vmem:[%s531_s4] sm:$0xff]  ;;  %v381_v27 = vpack.c.bf16 %v198_v26, %v197_v25  ;;  %s414_s4 = smov [#allocation2]  }
   0xa   :  { %377 = vmatprep.subr.bf16.mxu0 %v411_v3  ;;  %v378_v24 = vpack.c.bf16 %v196_v23, %v195_v22  ;;  %v296_v31 = vld [vmem:[%s530_s3] ss:$0 sm:$0xff]  ;;  %s286_s10 = sshll.u32 %s414_s4, 4  ;;  %s287_s10 = int_to_ptr.vmem [resolvable:$true] %s286_s10 }
   0xb   :  { %v297_v36 = vld [vmem:[%s532_s5] ss:$0 sm:$0xff]  ;;  %s387_s11 = scalar_lea.vmem %s287_s10, 128  ;;  %p392_p1 = scmp.lt.s32.totalorder %s287_s10, %s287_s10 }
   0xc   :  { %373 = vmatpush3.bf16.msra.mxu1 %v372_v16  ;;  %327 = vmatmul.mubr.msk.f32.vlgmr.msra.gmra.mrb[0].mxu0 %vm38_vm1, %v25_v19  ;;  %p388_p0 = scmp.ne.s32.totalorder %s287_s10, %s387_s11  ;;  %p393_p2 = scmp.lt.s32.totalorder %s387_s11, %s387_s11 }
   0xd   :  { %374 = vmatprep.subr.bf16.mxu1 %v411_v3  ;;  %356 = vmatprep.mubr.msk.f32.mxu0 %vm412_vm0, %v413_v10 }
   0xe   :  { %379 = vmatpush3.bf16.msra.mxu0 %v378_v24  ;;  %p394_p3 = por %p393_p2, %p392_p1 }
   0xf   :  { %380 = vmatprep.subr.bf16.mxu0 %v411_v3 }
  0x10   :  { %376 = vmatpush3.bf16.msra.mxu1 %v375_v20  ;;  %p395_p4 = pnand %p394_p3, %p388_p0 }
  0x12   :  { %382 = vmatpush3.bf16.msra.mxu0 %v381_v27 }
  0x13   :  { %346 = vmatmul.mubr.msk.f32.vlgmr.msra.gmra.mrb[0].mxu1 %vm112_vm2, %v24_v21 }
  0xdf   :  { %v108_v28 = vpop.f32.mrb[0].mxu0 }
  0xe0   :  { %v328_v29 = vpop.f32.mrb[1].mxu0 }
  0xe6   :  { %v182_v30 = vpop.f32.mrb[0].mxu1 }
  0xe7   :  { %v183_v32 = vadd.f32 %v182_v30, %v108_v28  ;;  %v347_v33 = vpop.f32.mrb[1].mxu1 }
  0xe9   :  { %v193_v34 = vadd.f32 %v296_v31, %v183_v32 }
  0xeb   :  { %v194_v35 = vmax.f32 %v193_v34, 0.0 }
  0xed   :  { %357 = vmatmul.mubr.msk.f32.vlgmr.msra.gmra.mrb[2].mxu0 %vm38_vm1, %v194_v35 }
 0x1c0   :  { %v275_v37 = vpop.f32.mrb[2].mxu0 }
 0x1c1   :  { %v276_v38 = vadd.f32 %v297_v36, %v275_v37  ;;  %v358_v39 = vpop.f32.mrb[3].mxu0 }
 0x1c3   :  { %279 = vst [vmem:[#allocation2] sm:$0xff] %v276_v38 }
 0x1c4   :  { %398 = shalt.err (!%p395_p4)
}
 0x1c5   :  { %s399_s13 = scalar_lea.hbm %s533_s6, 128 }
 0x1c6   :  { %p400_p5 = scmp.ne.s32.totalorder %s533_s6, %s399_s13  ;;  %p403_p6 = scmp.lt.u32.totalorder %s399_s13, %s533_s6 }
 0x1c8   :  { %p405_p7 = pnand %p403_p6, %p400_p5 }
 0x1ca   :  { %408 = shalt.err (!%p405_p7)
}
 0x1cb   :  { %289 = dma.vmem_to_hbm [thread:$0]  %s287_s10, 128, %s533_s6, [#allocation3]  }
 0x1cc   :  { %409 = dma.done.wait [#allocation3], 128  }
 0x1cd   :  { %410 = vsyncadd [#allocation3], 4294967168 }
 0x1ce   :  { %293 = vsyncpa [#allocation3], 1 }

</bundles_post_ra>
